<compile_context>
chip_gen: v7x
topology: tpu7x:2x2x1
jax: 0.10.0
libtpu: 0.0.40
codegen_flags: <defaults>
</compile_context>

<pallas_src>
import jax
import jax.numpy as jnp
from jax.experimental import pallas as pl
from jax.experimental.pallas import tpu as pltpu

IN_FEATURES = 4096


def _linear_kernel(x_ref, w_ref, b_ref, o_ref):
    """One n-step: full-K matmul, single output write with bias folded in.

    x_ref : (B, K)   resident activations (cast to the weight dtype for MXU)
    w_ref : (K, tn)  streamed bf16 weight tile, already (K, N) oriented
    b_ref : (1, tn)  bias tile (f32)
    o_ref : (B, tn)  f32 output block (written exactly once)
    """
    x = x_ref[...].astype(w_ref.dtype)
    o_ref[...] = (
        jnp.dot(x, w_ref[...], preferred_element_type=jnp.float32) + b_ref[...]
    )


def prepare_classifier_params(weight, bias, *, weight_dtype=jnp.bfloat16):
    """One-time prep (OUTSIDE the hot path).

    weight: (num_classes, 4096) f32 in PyTorch Linear layout.
    bias:   (num_classes,)      f32
    returns (w_prep, b_prep) with shapes (4096, N_pad) and (1, N_pad),
    where N_pad = ceil(num_classes / 128) * 128.  The weight is cast to bf16
    and transposed to (K, N) here so the kernel never transposes.
    """
    n, k = weight.shape
    assert k == IN_FEATURES
    n_pad = -(-n // 128) * 128
    w = weight.astype(weight_dtype).T  # (K, N): free, a copy is made anyway
    b = bias.astype(jnp.float32)
    if n_pad != n:
        w = jnp.pad(w, ((0, 0), (0, n_pad - n)))
        b = jnp.pad(b, (0, n_pad - n))
    return w, b.reshape(1, n_pad)


def classfier_forward(source, w_prep, b_prep, num_classes=None, *, tn=512):
    """Pallas implementation of Classfier.forward.

    source:  (B, 4096) float
    w_prep:  (4096, N_pad) (bf16 recommended) — from prepare_classifier_params
    b_prep:  (1, N_pad) float32
    returns (logits[:, :num_classes], source)  == PyTorch (source, tmp_mmd).
    """
    B, K = source.shape
    kw, n_pad = w_prep.shape
    assert K == IN_FEATURES and kw == K
    assert n_pad % 128 == 0 and b_prep.shape == (1, n_pad)
    if num_classes is None:
        num_classes = n_pad

    # --- tile-size selection (full-K tiles; N axis only) ---------------------
    # Give v7x's 2 TensorCores at least 2 parallel steps when there is room.
    if n_pad >= 256:
        tn = min(tn, n_pad // 2)
    tn = min(tn, n_pad)
    tn = max(128, (tn // 128) * 128)      # lane-aligned
    while n_pad % tn:                      # must evenly tile N_pad
        tn -= 128
    grid_n = n_pad // tn

    # 3-deep weight buffering only pays off when there are >= 3 steps to hide.
    if grid_n >= 3:
        w_spec = pl.BlockSpec(
            (K, tn), lambda n: (0, n), pipeline_mode=pl.Buffered(3)
        )
    else:
        w_spec = pl.BlockSpec((K, tn), lambda n: (0, n))

    w_bytes = K * n_pad * w_prep.dtype.itemsize
    cost = pl.CostEstimate(
        flops=2 * B * K * n_pad,
        transcendentals=0,
        bytes_accessed=w_bytes
        + B * K * source.dtype.itemsize
        + B * n_pad * 4
        + n_pad * 4,
    )

    out_padded = pl.pallas_call(
        _linear_kernel,
        out_shape=jax.ShapeDtypeStruct((B, n_pad), jnp.float32),
        grid_spec=pltpu.PrefetchScalarGridSpec(
            num_scalar_prefetch=0,
            grid=(grid_n,),
            in_specs=[
                # x: tiny, keep the full array VMEM-resident.
                pl.BlockSpec((B, K), lambda n: (0, 0)),
                # W tile in (K, N) layout: stream along n only (full K).
                w_spec,
                # bias tile: depends only on n.
                pl.BlockSpec((1, tn), lambda n: (0, n)),
            ],
            out_specs=pl.BlockSpec((B, tn), lambda n: (0, n)),
        ),
        compiler_params=pltpu.CompilerParams(
            dimension_semantics=("parallel",),
            vmem_limit_bytes=32 * 1024 * 1024,
        ),
        cost_estimate=cost,
    )(source, w_prep, b_prep)

    logits = out_padded if num_classes == n_pad else out_padded[:, :num_classes]
    tmp_mmd = source
    return logits, tmp_mmd


def init_params(key, num_classes):
    """Deterministic parameter init matching the module's __init__ (f32)."""
    kw, kb = jax.random.split(key)
    # self.fc1.weight.data.normal_(0, 0.005)
    weight = 0.005 * jax.random.normal(kw, (num_classes, IN_FEATURES), jnp.float32)
    # bias keeps PyTorch Linear default: U(-1/sqrt(in), 1/sqrt(in))
    bound = 1.0 / jnp.sqrt(float(IN_FEATURES))
    bias = jax.random.uniform(
        kb, (num_classes,), jnp.float32, minval=-bound, maxval=bound
    )
    return weight, bias


def _reference(source, w_prep, bias, num_classes):
    # Reference with the same quantization the kernel sees (bf16 x, bf16 w,
    # f32 accumulate), so only accumulation order differs.
    x_q = source.astype(jnp.bfloat16).astype(jnp.float32)
    w_q = w_prep[:, :num_classes].astype(jnp.float32)  # (K, N)
    return (
        jnp.dot(x_q, w_q, precision=jax.lax.Precision.HIGHEST)
        + bias.astype(jnp.float32)
    )


if __name__ == "__main__":
    key = jax.random.PRNGKey(0)
    k1, k2, k3, k4, k5, k6 = jax.random.split(key, 6)

    # --- case 1: small batch, lane-aligned num_classes (single grid step) ----
    B, nc = 8, 128
    source = jax.random.normal(k1, (B, IN_FEATURES), jnp.float32)
    weight, bias = init_params(k2, nc)
    w_prep, b_prep = prepare_classifier_params(weight, bias)

    logits, tmp_mmd = classfier_forward(source, w_prep, b_prep, nc)
    jax.block_until_ready((logits, tmp_mmd))

    ref = _reference(source, w_prep, bias, nc)
    assert logits.shape == (B, nc)
    assert jnp.allclose(logits, ref, atol=1e-3, rtol=1e-3)
    assert tmp_mmd is source  # forward returns the input untouched

    # --- case 2: non-aligned num_classes exercises the pad/slice path --------
    B2, nc2 = 4, 40
    source2 = jax.random.normal(k3, (B2, IN_FEATURES), jnp.float32)
    weight2, bias2 = init_params(k4, nc2)
    w_prep2, b_prep2 = prepare_classifier_params(weight2, bias2)

    logits2, tmp2 = classfier_forward(source2, w_prep2, b_prep2, nc2)
    jax.block_until_ready(logits2)

    ref2 = _reference(source2, w_prep2, bias2, nc2)
    assert logits2.shape == (B2, nc2)
    assert jnp.allclose(logits2, ref2, atol=1e-3, rtol=1e-3)
    assert tmp2 is source2

    # --- case 3: default module size (1000 classes) -> multi-step N axis -----
    B3, nc3 = 2, 1000
    source3 = jax.random.normal(k5, (B3, IN_FEATURES), jnp.float32)
    weight3, bias3 = init_params(k6, nc3)
    w_prep3, b_prep3 = prepare_classifier_params(weight3, bias3)

    logits3, tmp3 = classfier_forward(source3, w_prep3, b_prep3, nc3)
    jax.block_until_ready(logits3)

    ref3 = _reference(source3, w_prep3, bias3, nc3)
    assert logits3.shape == (B3, nc3)
    assert jnp.allclose(logits3, ref3, atol=1e-3, rtol=1e-3)
    assert tmp3 is source3

    print("KERNEL_OK")
</pallas_src>

<mosaic_0001>
module attributes {stable_mosaic.version = 11 : i64} {
  func.func @_linear_kernel(%arg0: i32, %arg1: memref<8x4096xf32, #tpu.memory_space<vmem>>, %arg2: memref<4096x128xbf16, #tpu.memory_space<vmem>>, %arg3: memref<1x128xf32, #tpu.memory_space<vmem>>, %arg4: memref<8x128xf32, #tpu.memory_space<vmem>>) attributes {dimension_semantics = [#tpu.dimension_semantics<parallel>], iteration_bounds = array<i64: 1>, scalar_prefetch = 0 : i64, scratch_operands = 0 : i64, tpu.core_type = #tpu.core_type<tc>, window_params = [{pipeline_mode = #tpu.pipeline_mode<synchronous>, transform_indices = @transform_0, window_bounds = array<i64: 8, 4096>}, {transform_indices = @transform_1, window_bounds = array<i64: 4096, 128>}, {transform_indices = @transform_2, window_bounds = array<i64: 1, 128>}, {transform_indices = @transform_3, window_bounds = array<i64: 8, 128>}]} {
    %c0 = arith.constant 0 : index
    %c0_0 = arith.constant 0 : index
    %0 = vector.load %arg1[%c0, %c0_0] : memref<8x4096xf32, #tpu.memory_space<vmem>>, vector<8x4096xf32>
    %1 = arith.truncf %0 : vector<8x4096xf32> to vector<8x4096xbf16>
    %c0_1 = arith.constant 0 : index
    %c0_2 = arith.constant 0 : index
    %2 = vector.load %arg2[%c0_1, %c0_2] : memref<4096x128xbf16, #tpu.memory_space<vmem>>, vector<4096x128xbf16>
    %cst = arith.constant dense<0.000000e+00> : vector<8x128xf32>
    %3 = tpu.matmul %1, %2, %cst {dimension_numbers = #tpu.dot_dimension_numbers<[1], [0], [0], [1], [0, 0, 1, 1], [], []>} : vector<8x4096xbf16>, vector<4096x128xbf16>, vector<8x128xf32> -> vector<8x128xf32>
    %c0_3 = arith.constant 0 : index
    %c0_4 = arith.constant 0 : index
    %4 = vector.load %arg3[%c0_3, %c0_4] : memref<1x128xf32, #tpu.memory_space<vmem>>, vector<1x128xf32>
    %5 = vector.broadcast %4 : vector<1x128xf32> to vector<8x128xf32>
    %6 = arith.addf %3, %5 : vector<8x128xf32>
    %c0_5 = arith.constant 0 : index
    %c0_6 = arith.constant 0 : index
    %7 = vector.load %arg4[%c0_5, %c0_6] : memref<8x128xf32, #tpu.memory_space<vmem>>, vector<8x128xf32>
    tpu.vector_store %arg4[%c0_5, %c0_6], %6 {strides = array<i32>} : memref<8x128xf32, #tpu.memory_space<vmem>>, vector<8x128xf32>,
    return
  }
  func.func @transform_0(%arg0: i32) -> (i32, i32) {
    %c0_i32 = arith.constant 0 : i32
    %c0_i32_0 = arith.constant 0 : i32
    %c0_i32_1 = arith.constant 0 : i32
    return %c0_i32, %c0_i32_0 : i32, i32
  }
  func.func @transform_1(%arg0: i32) -> (i32, i32) {
    %c0_i32 = arith.constant 0 : i32
    %c0_i32_0 = arith.constant 0 : i32
    return %c0_i32, %arg0 : i32, i32
  }
  func.func @transform_2(%arg0: i32) -> (i32, i32) {
    %c0_i32 = arith.constant 0 : i32
    %c0_i32_0 = arith.constant 0 : i32
    return %c0_i32, %arg0 : i32, i32
  }
  func.func @transform_3(%arg0: i32) -> (i32, i32) {
    %c0_i32 = arith.constant 0 : i32
    %c0_i32_0 = arith.constant 0 : i32
    return %c0_i32, %arg0 : i32, i32
  }
}

</mosaic_0001>

<bundles_post_ra>
// kernel: tpu_custom_call.1
= control target key start
LH: loop header
LB: loop body
LE: loop exit
PB: predicated region body
PF: predicated region fallthrough
CT: control target
= control target key end

     0   :  { %8 = vsyncpa [#allocation3], 0  ;;  %s3831_s0 = inlined_call_operand.hbm [shape: f32[8,4096], index: 0, kind: input, shape index: {}]   ;;  %s3832_s1 = inlined_call_operand.hbm [shape: bf16[4096,128], index: 1, kind: input, shape index: {}]   ;;  %s3833_s2 = inlined_call_operand.vmem [shape: f32[1,128], index: 2, kind: input, shape index: {}]   ;;  %s3834_s3 = inlined_call_operand.hbm [shape: f32[8,128], index: 3, kind: output, shape index: {}]  }
   0x1   :  { %9 = vsyncpa [#allocation6], 0 }
   0x2   :  { %10 = vsyncpa [#allocation4], 0  ;;  %s3760_s12 = smov [#allocation2]   ;;  %s3761_s14 = smov [#allocation5]  }
   0x3   :  { %s17_s13 = sshll.u32 %s3760_s12, 4  ;;  %s26_s15 = sshll.u32 %s3761_s14, 4  ;;  %s18_s13 = int_to_ptr.vmem [resolvable:$true] %s17_s13  ;;  %s3785_s15 = int_to_ptr.vmem [resolvable:$true] %s26_s15 }
   0x4   :  { %s3688_s18 = scalar_lea.hbm %s3831_s0, 4096 }
   0x5   :  { %p3689_p0 = scmp.ne.s32.totalorder %s3831_s0, %s3688_s18  ;;  %p3692_p1 = scmp.lt.u32.totalorder %s3688_s18, %s3831_s0 }
   0x7   :  { %p3694_p2 = pnand %p3692_p1, %p3689_p0 }
   0x9   :  { %3697 = shalt.err (!%p3694_p2)
}
   0xa   :  { %s3698_s23 = scalar_lea.vmem %s18_s13, 4096  ;;  %p3703_p4 = scmp.lt.s32.totalorder %s18_s13, %s18_s13 }
   0xb   :  { %p3699_p3 = scmp.ne.s32.totalorder %s18_s13, %s3698_s23  ;;  %p3704_p5 = scmp.lt.s32.totalorder %s3698_s23, %s3698_s23 }
   0xd   :  { %p3705_p6 = por %p3704_p5, %p3703_p4 }
   0xf   :  { %p3706_p7 = pnand %p3705_p6, %p3699_p3 }
  0x11   :  { %3709 = shalt.err (!%p3706_p7)
}
  0x12   :  { %20 = dma.hbm_to_vmem [thread:$0]  %s3831_s0, 4096, %s18_s13, [#allocation3]  }
  0x13   :  { %s3710_s28 = scalar_lea.hbm %s3832_s1, 32768 }
  0x14   :  { %p3711_p8 = scmp.ne.s32.totalorder %s3832_s1, %s3710_s28  ;;  %p3714_p9 = scmp.lt.u32.totalorder %s3710_s28, %s3832_s1 }
  0x16   :  { %p3716_p10 = pnand %p3714_p9, %p3711_p8 }
  0x18   :  { %3719 = shalt.err (!%p3716_p10)
}
  0x19   :  { %s3720_s6 = scalar_lea.vmem %s3785_s15, 32768  ;;  %p3725_p12 = scmp.lt.s32.totalorder %s3785_s15, %s3785_s15 }
  0x1a   :  { %p3721_p11 = scmp.ne.s32.totalorder %s3785_s15, %s3720_s6  ;;  %p3726_p13 = scmp.lt.s32.totalorder %s3720_s6, %s3720_s6 }
  0x1c   :  { %p3727_p0 = por %p3726_p13, %p3725_p12 }
  0x1e   :  { %p3728_p1 = pnand %p3727_p0, %p3721_p11 }
  0x20   :  { %3731 = shalt.err (!%p3728_p1)
}
  0x21   :  { %s3762_s0 = smov 64   ;;  %s3763_s7 = smov 4  }
  0x22   :  { %32 = dma.hbm_to_vmem [thread:$0]  %s3832_s1, 32768, %s3785_s15, [#allocation6], %s3762_s0, %s3762_s0, %s3763_s7  }
  0x23   :  { %3754 = dma.done.wait [#allocation3], 4096  }
  0x24   :  { %3755 = vsyncadd [#allocation3], 4294963200 }
  0x25   :  { %3756 = dma.done.wait [#allocation6], 32768  }
  0x26   :  { %3757 = vsyncadd [#allocation6], 4294934528  ;;  %v3432_v0 = vld [vmem:[#allocation5 + $0x40] sm:$0xff]   ;;  %v3436_v4 = vld [vmem:[#allocation5 + $0x48] sm:$0xff]  }
  0x27   :  { %v3433_v1 = vld [vmem:[#allocation5 + $0xc0] sm:$0xff]   ;;  %3075 = vmatprep.subr.bf16.mxu0 %v3432_v0  ;;  %v3437_v5 = vld [vmem:[#allocation5 + $0xc8] sm:$0xff]   ;;  %v3440_v8 = vld [vmem:[#allocation5 + $0x50] sm:$0xff]  }
  0x28   :  { %v3434_v2 = vld [vmem:[#allocation5] sm:$0xff]   ;;  %3097 = vmatprep.subr.bf16.mxu1 %v3433_v1  ;;  %v3438_v6 = vld [vmem:[#allocation5 + $0x8] sm:$0xff]   ;;  %v3441_v9 = vld [vmem:[#allocation5 + $0xd0] sm:$0xff]  }
  0x29   :  { %v3435_v3 = vld [vmem:[#allocation5 + $0x80] sm:$0xff]   ;;  %3076 = vmatpush3.bf16.msra.mxu0 %v3434_v2  ;;  %v3439_v7 = vld [vmem:[#allocation5 + $0x88] sm:$0xff]   ;;  %v3442_v10 = vld [vmem:[#allocation5 + $0x10] sm:$0xff]  }
  0x2a   :  { %3098 = vmatpush3.bf16.msra.mxu1 %v3435_v3  ;;  %3077 = vmatprep.subr.bf16.mxu0 %v3436_v4  ;;  %v3443_v11 = vld [vmem:[#allocation5 + $0x90] sm:$0xff]   ;;  %v3444_v12 = vld [vmem:[#allocation5 + $0x58] sm:$0xff]   ;;  %v3448_v16 = vld [vmem:[#allocation5 + $0x60] sm:$0xff]  }
  0x2b   :  { %3099 = vmatprep.subr.bf16.mxu1 %v3437_v5  ;;  %v3445_v13 = vld [vmem:[#allocation5 + $0xd8] sm:$0xff]   ;;  %v3449_v17 = vld [vmem:[#allocation5 + $0xe0] sm:$0xff]   ;;  %v3452_v20 = vld [vmem:[#allocation5 + $0x68] sm:$0xff]  }
  0x2c   :  { %v3446_v14 = vld [vmem:[#allocation5 + $0x18] sm:$0xff]   ;;  %v3450_v18 = vld [vmem:[#allocation5 + $0x20] sm:$0xff]   ;;  %v3453_v21 = vld [vmem:[#allocation5 + $0xe8] sm:$0xff]  }
  0x2d   :  { %3078 = vmatpush3.bf16.msra.mxu0 %v3438_v6  ;;  %v3447_v15 = vld [vmem:[#allocation5 + $0x98] sm:$0xff]   ;;  %v3451_v19 = vld [vmem:[#allocation5 + $0xa0] sm:$0xff]   ;;  %v3454_v22 = vld [vmem:[#allocation5 + $0x28] sm:$0xff]  }
  0x2e   :  { %3100 = vmatpush3.bf16.msra.mxu1 %v3439_v7  ;;  %3079 = vmatprep.subr.bf16.mxu0 %v3440_v8  ;;  %v3455_v23 = vld [vmem:[#allocation5 + $0xa8] sm:$0xff]   ;;  %v3456_v24 = vld [vmem:[#allocation5 + $0x70] sm:$0xff]   ;;  %v3460_v28 = vld [vmem:[#allocation5 + $0x78] sm:$0xff]  }
  0x2f   :  { %3101 = vmatprep.subr.bf16.mxu1 %v3441_v9  ;;  %v3457_v25 = vld [vmem:[#allocation5 + $0xf0] sm:$0xff]   ;;  %v3461_v29 = vld [vmem:[#allocation5 + $0xf8] sm:$0xff]   ;;  %v43_v32 = vld [vmem:[#allocation2 + $0x8] sm:$0xff] }
  0x30   :  { %v3458_v26 = vld [vmem:[#allocation5 + $0x30] sm:$0xff]   ;;  %v3462_v30 = vld [vmem:[#allocation5 + $0x38] sm:$0xff]   ;;  %v42_v34 = vld [vmem:[#allocation2] sm:$0xff]  ;;  %v75_v35 = vpack.c.bf16 %v43_v32, %v43_v32 }
  0x31   :  { %3080 = vmatpush3.bf16.msra.mxu0 %v3442_v10  ;;  %v3459_v27 = vld [vmem:[#allocation5 + $0xb0] sm:$0xff]   ;;  %v3463_v31 = vld [vmem:[#allocation5 + $0xb8] sm:$0xff]   ;;  %v74_v37 = vpack.c.bf16 %v42_v34, %v42_v34  ;;  %v3464_v40 = vld [vmem:[#allocation5 + $0x140] sm:$0xff]  }
  0x32   :  { %3102 = vmatpush3.bf16.msra.mxu1 %v3443_v11  ;;  %3081 = vmatprep.subr.bf16.mxu0 %v3444_v12  ;;  %v45_v33 = vld [vmem:[#allocation2 + $0x18] sm:$0xff]  ;;  %v44_v38 = vld [vmem:[#allocation2 + $0x10] sm:$0xff]  ;;  %v3465_v41 = vld [vmem:[#allocation5 + $0x1c0] sm:$0xff]  }
  0x33   :  { %3103 = vmatprep.subr.bf16.mxu1 %v3445_v13  ;;  %v77_v36 = vpack.c.bf16 %v45_v33, %v45_v33  ;;  %v76_v39 = vpack.c.bf16 %v44_v38, %v44_v38  ;;  %2193 = vmatprep.mubr.bf16.mxu0 %v75_v35  ;;  %v3466_v42 = vld [vmem:[#allocation5 + $0x100] sm:$0xff]   ;;  %v3468_v44 = vld [vmem:[#allocation5 + $0x148] sm:$0xff]   ;;  %v3472_v48 = vld [vmem:[#allocation5 + $0x150] sm:$0xff]  }
  0x34   :  { %v3467_v43 = vld [vmem:[#allocation5 + $0x180] sm:$0xff]   ;;  %v3469_v45 = vld [vmem:[#allocation5 + $0x1c8] sm:$0xff]   ;;  %v3473_v49 = vld [vmem:[#allocation5 + $0x1d0] sm:$0xff]  }
  0x35   :  { %3082 = vmatpush3.bf16.msra.mxu0 %v3446_v14  ;;  %2233 = vmatprep.mubr.bf16.mxu1 %v77_v36  ;;  %v3470_v46 = vld [vmem:[#allocation5 + $0x108] sm:$0xff]   ;;  %v3474_v50 = vld [vmem:[#allocation5 + $0x110] sm:$0xff]   ;;  %v3476_v52 = vld [vmem:[#allocation5 + $0x158] sm:$0xff]  }
  0x36   :  { %3104 = vmatpush3.bf16.msra.mxu1 %v3447_v15  ;;  %3083 = vmatprep.subr.bf16.mxu0 %v3448_v16  ;;  %v3471_v47 = vld [vmem:[#allocation5 + $0x188] sm:$0xff]   ;;  %v3475_v51 = vld [vmem:[#allocation5 + $0x190] sm:$0xff]   ;;  %v3477_v53 = vld [vmem:[#allocation5 + $0x1d8] sm:$0xff]  }
  0x37   :  { %3105 = vmatprep.subr.bf16.mxu1 %v3449_v17  ;;  %v3478_v54 = vld [vmem:[#allocation5 + $0x118] sm:$0xff]   ;;  %v3480_v56 = vld [vmem:[#allocation5 + $0x160] sm:$0xff]   ;;  %v3484_v60 = vld [vmem:[#allocation5 + $0x168] sm:$0xff]  }
  0x38   :  { %v3479_v55 = vld [vmem:[#allocation5 + $0x198] sm:$0xff]   ;;  %v3481_v57 = vld [vmem:[#allocation5 + $0x1e0] sm:$0xff]   ;;  %v3485_v61 = vld [vmem:[#allocation5 + $0x1e8] sm:$0xff]  }
  0x39   :  { %3084 = vmatpush3.bf16.msra.mxu0 %v3450_v18  ;;  %v3482_v58 = vld [vmem:[#allocation5 + $0x120] sm:$0xff]   ;;  %v3486_v62 = vld [vmem:[#allocation5 + $0x128] sm:$0xff]   ;;  %v3488_v0 = vld [vmem:[#allocation5 + $0x170] sm:$0xff]  }
  0x3a   :  { %3106 = vmatpush3.bf16.msra.mxu1 %v3451_v19  ;;  %3085 = vmatprep.subr.bf16.mxu0 %v3452_v20  ;;  %v3483_v59 = vld [vmem:[#allocation5 + $0x1a0] sm:$0xff]   ;;  %v3487_v63 = vld [vmem:[#allocation5 + $0x1a8] sm:$0xff]   ;;  %v3489_v1 = vld [vmem:[#allocation5 + $0x1f0] sm:$0xff]  }
  0x3b   :  { %3107 = vmatprep.subr.bf16.mxu1 %v3453_v21  ;;  %v3490_v2 = vld [vmem:[#allocation5 + $0x130] sm:$0xff]   ;;  %v3492_v4 = vld [vmem:[#allocation5 + $0x178] sm:$0xff]   ;;  %v47_v8 = vld [vmem:[#allocation2 + $0x28] sm:$0xff] }
  0x3c   :  { %v3491_v3 = vld [vmem:[#allocation5 + $0x1b0] sm:$0xff]   ;;  %v3493_v5 = vld [vmem:[#allocation5 + $0x1f8] sm:$0xff]   ;;  %v79_v10 = vpack.c.bf16 %v47_v8, %v47_v8  ;;  %v46_v12 = vld [vmem:[#allocation2 + $0x20] sm:$0xff] }
  0x3d   :  { %3086 = vmatpush3.bf16.msra.mxu0 %v3454_v22  ;;  %v3494_v6 = vld [vmem:[#allocation5 + $0x138] sm:$0xff]   ;;  %v48_v13 = vld [vmem:[#allocation2 + $0x30] sm:$0xff]  ;;  %v78_v14 = vpack.c.bf16 %v46_v12, %v46_v12  ;;  %v3496_v16 = vld [vmem:[#allocation5 + $0x240] sm:$0xff]  }
  0x3e   :  { %3108 = vmatpush3.bf16.msra.mxu1 %v3455_v23  ;;  %3087 = vmatprep.subr.bf16.mxu0 %v3456_v24  ;;  %v3495_v7 = vld [vmem:[#allocation5 + $0x1b8] sm:$0xff]   ;;  %v80_v15 = vpack.c.bf16 %v48_v13, %v48_v13  ;;  %v3497_v17 = vld [vmem:[#allocation5 + $0x2c0] sm:$0xff]   ;;  %v3500_v20 = vld [vmem:[#allocation5 + $0x248] sm:$0xff]  }
  0x3f   :  { %3109 = vmatprep.subr.bf16.mxu1 %v3457_v25  ;;  %v49_v9 = vld [vmem:[#allocation2 + $0x38] sm:$0xff]  ;;  %v3498_v18 = vld [vmem:[#allocation5 + $0x200] sm:$0xff]   ;;  %v3501_v21 = vld [vmem:[#allocation5 + $0x2c8] sm:$0xff]  }
  0x40   :  { %v81_v11 = vpack.c.bf16 %v49_v9, %v49_v9  ;;  %v3499_v19 = vld [vmem:[#allocation5 + $0x280] sm:$0xff]   ;;  %v3502_v22 = vld [vmem:[#allocation5 + $0x208] sm:$0xff]   ;;  %v3504_v24 = vld [vmem:[#allocation5 + $0x250] sm:$0xff]  }
  0x41   :  { %3088 = vmatpush3.bf16.msra.mxu0 %v3458_v26  ;;  %v3503_v23 = vld [vmem:[#allocation5 + $0x288] sm:$0xff]   ;;  %v3505_v25 = vld [vmem:[#allocation5 + $0x2d0] sm:$0xff]   ;;  %v3512_v32 = vld [vmem:[#allocation5 + $0x260] sm:$0xff]  }
  0x42   :  { %3110 = vmatpush3.bf16.msra.mxu1 %v3459_v27  ;;  %3089 = vmatprep.subr.bf16.mxu0 %v3460_v28  ;;  %v3506_v26 = vld [vmem:[#allocation5 + $0x210] sm:$0xff]   ;;  %v3508_v28 = vld [vmem:[#allocation5 + $0x258] sm:$0xff]   ;;  %v3513_v33 = vld [vmem:[#allocation5 + $0x2e0] sm:$0xff]  }
  0x43   :  { %3111 = vmatprep.subr.bf16.mxu1 %v3461_v29  ;;  %v3507_v27 = vld [vmem:[#allocation5 + $0x290] sm:$0xff]   ;;  %v3509_v29 = vld [vmem:[#allocation5 + $0x2d8] sm:$0xff]   ;;  %v3514_v34 = vld [vmem:[#allocation5 + $0x220] sm:$0xff]  }
  0x44   :  { %v3515_v35 = vld [vmem:[#allocation5 + $0x2a0] sm:$0xff]   ;;  %v3516_v36 = vld [vmem:[#allocation5 + $0x268] sm:$0xff]  }
  0x45   :  { %3090 = vmatpush3.bf16.msra.mxu0 %v3462_v30  ;;  %v3510_v30 = vld [vmem:[#allocation5 + $0x218] sm:$0xff]   ;;  %v3518_v38 = vld [vmem:[#allocation5 + $0x228] sm:$0xff]   ;;  %v3544_v8 = vld [vmem:[#allocation5 + $0x360] sm:$0xff]  }
  0x46   :  { %3112 = vmatpush3.bf16.msra.mxu1 %v3463_v31  ;;  %3119 = vmatprep.subr.bf16.mxu0 %v3464_v40  ;;  %v3511_v31 = vld [vmem:[#allocation5 + $0x298] sm:$0xff]   ;;  %v3520_v40 = vld [vmem:[#allocation5 + $0x270] sm:$0xff]   ;;  %v3545_v9 = vld [vmem:[#allocation5 + $0x3e0] sm:$0xff]  }
  0x47   :  { %3141 = vmatprep.subr.bf16.mxu1 %v3465_v41  ;;  %v3521_v41 = vld [vmem:[#allocation5 + $0x2f0] sm:$0xff]   ;;  %v3548_v12 = vld [vmem:[#allocation5 + $0x368] sm:$0xff]  }
  0x48   :  { %2194 = vmatmul.mubr.bf16.vlgmr.msra.gmra.mrb[0].mxu0 %v74_v37  ;;  %v3517_v37 = vld [vmem:[#allocation5 + $0x2e8] sm:$0xff]  }
  0x49   :  { %2234 = vmatmul.mubr.bf16.vlgmr.msra.gmra.mrb[0].mxu1 %v76_v39  ;;  %3120 = vmatpush3.bf16.msra.mxu0 %v3466_v42  ;;  %v3519_v39 = vld [vmem:[#allocation5 + $0x2a8] sm:$0xff]   ;;  %v3522_v42 = vld [vmem:[#allocation5 + $0x230] sm:$0xff]  }
  0x4a   :  { %3142 = vmatpush3.bf16.msra.mxu1 %v3467_v43  ;;  %3121 = vmatprep.subr.bf16.mxu0 %v3468_v44  ;;  %v3523_v43 = vld [vmem:[#allocation5 + $0x2b0] sm:$0xff]   ;;  %v3524_v44 = vld [vmem:[#allocation5 + $0x278] sm:$0xff]   ;;  %v3549_v13 = vld [vmem:[#allocation5 + $0x3e8] sm:$0xff]  }
  0x4b   :  { %3143 = vmatprep.subr.bf16.mxu1 %v3469_v45  ;;  %2273 = vmatprep.mubr.bf16.mxu0 %v79_v10  ;;  %v3525_v45 = vld [vmem:[#allocation5 + $0x2f8] sm:$0xff]   ;;  %v3546_v10 = vld [vmem:[#allocation5 + $0x320] sm:$0xff]  }
  0x4c   :  { %2313 = vmatprep.mubr.bf16.mxu1 %v81_v11  ;;  %v3547_v11 = vld [vmem:[#allocation5 + $0x3a0] sm:$0xff]  }
  0x4d   :  { %3122 = vmatpush3.bf16.msra.mxu0 %v3470_v46  ;;  %v3526_v46 = vld [vmem:[#allocation5 + $0x238] sm:$0xff]  }
  0x4e   :  { %3144 = vmatpush3.bf16.msra.mxu1 %v3471_v47  ;;  %3123 = vmatprep.subr.bf16.mxu0 %v3472_v48  ;;  %v3527_v47 = vld [vmem:[#allocation5 + $0x2b8] sm:$0xff]   ;;  %v51_v48 = vld [vmem:[#allocation2 + $0x48] sm:$0xff] }
  0x4f   :  { %3145 = vmatprep.subr.bf16.mxu1 %v3473_v49  ;;  %v83_v49 = vpack.c.bf16 %v51_v48, %v51_v48  ;;  %v3576_v48 = vld [vmem:[#allocation5 + $0x460] sm:$0xff]  }
  0x51   :  { %3124 = vmatpush3.bf16.msra.mxu0 %v3474_v50  ;;  %v53_v50 = vld [vmem:[#allocation2 + $0x58] sm:$0xff] }
  0x52   :  { %3146 = vmatpush3.bf16.msra.mxu1 %v3475_v51  ;;  %3125 = vmatprep.subr.bf16.mxu0 %v3476_v52  ;;  %v50_v51 = vld [vmem:[#allocation2 + $0x40] sm:$0xff]  ;;  %v52_v52 = vld [vmem:[#allocation2 + $0x50] sm:$0xff] }
  0x53   :  { %3147 = vmatprep.subr.bf16.mxu1 %v3477_v53  ;;  %v85_v53 = vpack.c.bf16 %v53_v50, %v53_v50  ;;  %v3578_v50 = vld [vmem:[#allocation5 + $0x420] sm:$0xff]  }
  0x55   :  { %3126 = vmatpush3.bf16.msra.mxu0 %v3478_v54  ;;  %v82_v54 = vpack.c.bf16 %v50_v51, %v50_v51  ;;  %v3579_v51 = vld [vmem:[#allocation5 + $0x4a0] sm:$0xff]  }
  0x56   :  { %3148 = vmatpush3.bf16.msra.mxu1 %v3479_v55  ;;  %3127 = vmatprep.subr.bf16.mxu0 %v3480_v56  ;;  %v84_v55 = vpack.c.bf16 %v52_v52, %v52_v52  ;;  %v3528_v56 = vld [vmem:[#allocation5 + $0x340] sm:$0xff]   ;;  %v3580_v52 = vld [vmem:[#allocation5 + $0x468] sm:$0xff]  }
  0x57   :  { %3149 = vmatprep.subr.bf16.mxu1 %v3481_v57  ;;  %v3529_v57 = vld [vmem:[#allocation5 + $0x3c0] sm:$0xff]  }
  0x59   :  { %3128 = vmatpush3.bf16.msra.mxu0 %v3482_v58  ;;  %v3530_v58 = vld [vmem:[#allocation5 + $0x300] sm:$0xff]  }
  0x5a   :  { %3150 = vmatpush3.bf16.msra.mxu1 %v3483_v59  ;;  %3129 = vmatprep.subr.bf16.mxu0 %v3484_v60  ;;  %v3531_v59 = vld [vmem:[#allocation5 + $0x380] sm:$0xff]   ;;  %v3532_v60 = vld [vmem:[#allocation5 + $0x348] sm:$0xff]  }
  0x5b   :  { %3151 = vmatprep.subr.bf16.mxu1 %v3485_v61  ;;  %v3533_v61 = vld [vmem:[#allocation5 + $0x3c8] sm:$0xff]  }
  0x5d   :  { %3130 = vmatpush3.bf16.msra.mxu0 %v3486_v62  ;;  %v3534_v62 = vld [vmem:[#allocation5 + $0x308] sm:$0xff]  }
  0x5e   :  { %3152 = vmatpush3.bf16.msra.mxu1 %v3487_v63  ;;  %3131 = vmatprep.subr.bf16.mxu0 %v3488_v0  ;;  %v3535_v63 = vld [vmem:[#allocation5 + $0x388] sm:$0xff]   ;;  %v3536_v0 = vld [vmem:[#allocation5 + $0x350] sm:$0xff]  }
  0x5f   :  { %3153 = vmatprep.subr.bf16.mxu1 %v3489_v1  ;;  %v3537_v1 = vld [vmem:[#allocation5 + $0x3d0] sm:$0xff]  }
  0x61   :  { %3132 = vmatpush3.bf16.msra.mxu0 %v3490_v2  ;;  %v3538_v2 = vld [vmem:[#allocation5 + $0x310] sm:$0xff]  }
  0x62   :  { %3154 = vmatpush3.bf16.msra.mxu1 %v3491_v3  ;;  %3133 = vmatprep.subr.bf16.mxu0 %v3492_v4  ;;  %v3539_v3 = vld [vmem:[#allocation5 + $0x390] sm:$0xff]   ;;  %v3540_v4 = vld [vmem:[#allocation5 + $0x358] sm:$0xff]  }
  0x63   :  { %3155 = vmatprep.subr.bf16.mxu1 %v3493_v5  ;;  %v3541_v5 = vld [vmem:[#allocation5 + $0x3d8] sm:$0xff]  }
  0x65   :  { %3134 = vmatpush3.bf16.msra.mxu0 %v3494_v6  ;;  %v3542_v6 = vld [vmem:[#allocation5 + $0x318] sm:$0xff]  }
  0x66   :  { %3156 = vmatpush3.bf16.msra.mxu1 %v3495_v7  ;;  %3163 = vmatprep.subr.bf16.mxu0 %v3496_v16  ;;  %v3543_v7 = vld [vmem:[#allocation5 + $0x398] sm:$0xff]   ;;  %v3552_v16 = vld [vmem:[#allocation5 + $0x370] sm:$0xff]  }
  0x67   :  { %3185 = vmatprep.subr.bf16.mxu1 %v3497_v17  ;;  %v3553_v17 = vld [vmem:[#allocation5 + $0x3f0] sm:$0xff]  }
  0x68   :  { %2274 = vmatmul.mubr.bf16.vlgmr.msra.gmra.mrb[4].mxu0 %v78_v14  ;;  %v3550_v14 = vld [vmem:[#allocation5 + $0x328] sm:$0xff]  }
  0x69   :  { %2314 = vmatmul.mubr.bf16.vlgmr.msra.gmra.mrb[4].mxu1 %v80_v15  ;;  %3164 = vmatpush3.bf16.msra.mxu0 %v3498_v18  ;;  %v3551_v15 = vld [vmem:[#allocation5 + $0x3a8] sm:$0xff]   ;;  %v3554_v18 = vld [vmem:[#allocation5 + $0x330] sm:$0xff]  }
  0x6a   :  { %3186 = vmatpush3.bf16.msra.mxu1 %v3499_v19  ;;  %3165 = vmatprep.subr.bf16.mxu0 %v3500_v20  ;;  %v3555_v19 = vld [vmem:[#allocation5 + $0x3b0] sm:$0xff]   ;;  %v3556_v20 = vld [vmem:[#allocation5 + $0x378] sm:$0xff]  }
  0x6b   :  { %3187 = vmatprep.subr.bf16.mxu1 %v3501_v21  ;;  %2353 = vmatprep.mubr.bf16.mxu0 %v83_v49  ;;  %v3557_v21 = vld [vmem:[#allocation5 + $0x3f8] sm:$0xff]   ;;  %v3577_v49 = vld [vmem:[#allocation5 + $0x4e0] sm:$0xff]  }
  0x6c   :  { %2393 = vmatprep.mubr.bf16.mxu1 %v85_v53  ;;  %v3581_v53 = vld [vmem:[#allocation5 + $0x4e8] sm:$0xff]  }
  0x6d   :  { %3166 = vmatpush3.bf16.msra.mxu0 %v3502_v22  ;;  %v3558_v22 = vld [vmem:[#allocation5 + $0x338] sm:$0xff]  }
  0x6e   :  { %3188 = vmatpush3.bf16.msra.mxu1 %v3503_v23  ;;  %3167 = vmatprep.subr.bf16.mxu0 %v3504_v24  ;;  %v3559_v23 = vld [vmem:[#allocation5 + $0x3b8] sm:$0xff]   ;;  %v55_v24 = vld [vmem:[#allocation2 + $0x68] sm:$0xff] }
  0x6f   :  { %3189 = vmatprep.subr.bf16.mxu1 %v3505_v25  ;;  %v57_v25 = vld [vmem:[#allocation2 + $0x78] sm:$0xff] }
  0x71   :  { %3168 = vmatpush3.bf16.msra.mxu0 %v3506_v26  ;;  %v54_v26 = vld [vmem:[#allocation2 + $0x60] sm:$0xff] }
  0x72   :  { %3190 = vmatpush3.bf16.msra.mxu1 %v3507_v27  ;;  %3169 = vmatprep.subr.bf16.mxu0 %v3508_v28  ;;  %v87_v27 = vpack.c.bf16 %v55_v24, %v55_v24  ;;  %v89_v28 = vpack.c.bf16 %v57_v25, %v57_v25  ;;  %v3608_v24 = vld [vmem:[#allocation5 + $0x560] sm:$0xff]  }
  0x73   :  { %3191 = vmatprep.subr.bf16.mxu1 %v3509_v29  ;;  %v86_v29 = vpack.c.bf16 %v54_v26, %v54_v26  ;;  %v3609_v25 = vld [vmem:[#allocation5 + $0x5e0] sm:$0xff]  }
  0x74   :  { %v3610_v26 = vld [vmem:[#allocation5 + $0x520] sm:$0xff]  }
  0x75   :  { %3170 = vmatpush3.bf16.msra.mxu0 %v3510_v30  ;;  %v56_v30 = vld [vmem:[#allocation2 + $0x70] sm:$0xff] }
  0x76   :  { %3192 = vmatpush3.bf16.msra.mxu1 %v3511_v31  ;;  %3171 = vmatprep.subr.bf16.mxu0 %v3512_v32  ;;  %v88_v31 = vpack.c.bf16 %v56_v30, %v56_v30  ;;  %v3560_v32 = vld [vmem:[#allocation5 + $0x440] sm:$0xff]   ;;  %v3614_v30 = vld [vmem:[#allocation5 + $0x528] sm:$0xff]  }
  0x77   :  { %3193 = vmatprep.subr.bf16.mxu1 %v3513_v33  ;;  %v3561_v33 = vld [vmem:[#allocation5 + $0x4c0] sm:$0xff]  }
  0x79   :  { %3172 = vmatpush3.bf16.msra.mxu0 %v3514_v34  ;;  %v3562_v34 = vld [vmem:[#allocation5 + $0x400] sm:$0xff]  }
  0x7a   :  { %3194 = vmatpush3.bf16.msra.mxu1 %v3515_v35  ;;  %3173 = vmatprep.subr.bf16.mxu0 %v3516_v36  ;;  %v3563_v35 = vld [vmem:[#allocation5 + $0x480] sm:$0xff]   ;;  %v3564_v36 = vld [vmem:[#allocation5 + $0x448] sm:$0xff]  }
  0x7b   :  { %3195 = vmatprep.subr.bf16.mxu1 %v3517_v37  ;;  %v3565_v37 = vld [vmem:[#allocation5 + $0x4c8] sm:$0xff]  }
  0x7d   :  { %3174 = vmatpush3.bf16.msra.mxu0 %v3518_v38  ;;  %v3566_v38 = vld [vmem:[#allocation5 + $0x408] sm:$0xff]  }
  0x7e   :  { %3196 = vmatpush3.bf16.msra.mxu1 %v3519_v39  ;;  %3175 = vmatprep.subr.bf16.mxu0 %v3520_v40  ;;  %v3567_v39 = vld [vmem:[#allocation5 + $0x488] sm:$0xff]   ;;  %v3568_v40 = vld [vmem:[#allocation5 + $0x450] sm:$0xff]  }
  0x7f   :  { %3197 = vmatprep.subr.bf16.mxu1 %v3521_v41  ;;  %v3569_v41 = vld [vmem:[#allocation5 + $0x4d0] sm:$0xff]  }
  0x81   :  { %3176 = vmatpush3.bf16.msra.mxu0 %v3522_v42  ;;  %v3570_v42 = vld [vmem:[#allocation5 + $0x410] sm:$0xff]  }
  0x82   :  { %3198 = vmatpush3.bf16.msra.mxu1 %v3523_v43  ;;  %3177 = vmatprep.subr.bf16.mxu0 %v3524_v44  ;;  %v3571_v43 = vld [vmem:[#allocation5 + $0x490] sm:$0xff]   ;;  %v3572_v44 = vld [vmem:[#allocation5 + $0x458] sm:$0xff]  }
  0x83   :  { %3199 = vmatprep.subr.bf16.mxu1 %v3525_v45  ;;  %v3573_v45 = vld [vmem:[#allocation5 + $0x4d8] sm:$0xff]  }
  0x85   :  { %3178 = vmatpush3.bf16.msra.mxu0 %v3526_v46  ;;  %v3574_v46 = vld [vmem:[#allocation5 + $0x418] sm:$0xff]  }
  0x86   :  { %3200 = vmatpush3.bf16.msra.mxu1 %v3527_v47  ;;  %3207 = vmatprep.subr.bf16.mxu0 %v3528_v56  ;;  %v3575_v47 = vld [vmem:[#allocation5 + $0x498] sm:$0xff]   ;;  %v3584_v56 = vld [vmem:[#allocation5 + $0x470] sm:$0xff]  }
  0x87   :  { %3229 = vmatprep.subr.bf16.mxu1 %v3529_v57  ;;  %v3585_v57 = vld [vmem:[#allocation5 + $0x4f0] sm:$0xff]  }
  0x88   :  { %2354 = vmatmul.mubr.bf16.vlgmr.msra.gmra.mrb[8].mxu0 %v82_v54  ;;  %v3582_v54 = vld [vmem:[#allocation5 + $0x428] sm:$0xff]  }
  0x89   :  { %2394 = vmatmul.mubr.bf16.vlgmr.msra.gmra.mrb[8].mxu1 %v84_v55  ;;  %3208 = vmatpush3.bf16.msra.mxu0 %v3530_v58  ;;  %v3583_v55 = vld [vmem:[#allocation5 + $0x4a8] sm:$0xff]   ;;  %v3586_v58 = vld [vmem:[#allocation5 + $0x430] sm:$0xff]  }
  0x8a   :  { %3230 = vmatpush3.bf16.msra.mxu1 %v3531_v59  ;;  %3209 = vmatprep.subr.bf16.mxu0 %v3532_v60  ;;  %v3587_v59 = vld [vmem:[#allocation5 + $0x4b0] sm:$0xff]   ;;  %v3588_v60 = vld [vmem:[#allocation5 + $0x478] sm:$0xff]  }
  0x8b   :  { %3231 = vmatprep.subr.bf16.mxu1 %v3533_v61  ;;  %2433 = vmatprep.mubr.bf16.mxu0 %v87_v27  ;;  %v3589_v61 = vld [vmem:[#allocation5 + $0x4f8] sm:$0xff]   ;;  %v3611_v27 = vld [vmem:[#allocation5 + $0x5a0] sm:$0xff]  }
  0x8c   :  { %2473 = vmatprep.mubr.bf16.mxu1 %v89_v28  ;;  %v3612_v28 = vld [vmem:[#allocation5 + $0x568] sm:$0xff]  }
  0x8d   :  { %3210 = vmatpush3.bf16.msra.mxu0 %v3534_v62  ;;  %v3590_v62 = vld [vmem:[#allocation5 + $0x438] sm:$0xff]  }
  0x8e   :  { %3232 = vmatpush3.bf16.msra.mxu1 %v3535_v63  ;;  %3211 = vmatprep.subr.bf16.mxu0 %v3536_v0  ;;  %v3591_v63 = vld [vmem:[#allocation5 + $0x4b8] sm:$0xff]   ;;  %v59_v0 = vld [vmem:[#allocation2 + $0x88] sm:$0xff] }
  0x8f   :  { %3233 = vmatprep.subr.bf16.mxu1 %v3537_v1  ;;  %v61_v1 = vld [vmem:[#allocation2 + $0x98] sm:$0xff] }
  0x91   :  { %3212 = vmatpush3.bf16.msra.mxu0 %v3538_v2  ;;  %v91_v2 = vpack.c.bf16 %v59_v0, %v59_v0  ;;  %v3640_v0 = vld [vmem:[#allocation5 + $0x660] sm:$0xff]  }
  0x92   :  { %3234 = vmatpush3.bf16.msra.mxu1 %v3539_v3  ;;  %3213 = vmatprep.subr.bf16.mxu0 %v3540_v4  ;;  %v93_v3 = vpack.c.bf16 %v61_v1, %v61_v1  ;;  %v58_v4 = vld [vmem:[#allocation2 + $0x80] sm:$0xff] }
  0x93   :  { %3235 = vmatprep.subr.bf16.mxu1 %v3541_v5  ;;  %v60_v5 = vld [vmem:[#allocation2 + $0x90] sm:$0xff]  ;;  %v3641_v1 = vld [vmem:[#allocation5 + $0x6e0] sm:$0xff]  }
  0x95   :  { %3214 = vmatpush3.bf16.msra.mxu0 %v3542_v6  ;;  %v90_v6 = vpack.c.bf16 %v58_v4, %v58_v4  ;;  %v3644_v4 = vld [vmem:[#allocation5 + $0x668] sm:$0xff]  }
  0x96   :  { %3236 = vmatpush3.bf16.msra.mxu1 %v3543_v7  ;;  %3215 = vmatprep.subr.bf16.mxu0 %v3544_v8  ;;  %v92_v7 = vpack.c.bf16 %v60_v5, %v60_v5  ;;  %v3592_v8 = vld [vmem:[#allocation5 + $0x540] sm:$0xff]   ;;  %v3645_v5 = vld [vmem:[#allocation5 + $0x6e8] sm:$0xff]  }
  0x97   :  { %3237 = vmatprep.subr.bf16.mxu1 %v3545_v9  ;;  %v3593_v9 = vld [vmem:[#allocation5 + $0x5c0] sm:$0xff]  }
  0x99   :  { %3216 = vmatpush3.bf16.msra.mxu0 %v3546_v10  ;;  %v3594_v10 = vld [vmem:[#allocation5 + $0x500] sm:$0xff]  }
  0x9a   :  { %3238 = vmatpush3.bf16.msra.mxu1 %v3547_v11  ;;  %3217 = vmatprep.subr.bf16.mxu0 %v3548_v12  ;;  %v3595_v11 = vld [vmem:[#allocation5 + $0x580] sm:$0xff]   ;;  %v3596_v12 = vld [vmem:[#allocation5 + $0x548] sm:$0xff]  }
  0x9b   :  { %3239 = vmatprep.subr.bf16.mxu1 %v3549_v13  ;;  %v3597_v13 = vld [vmem:[#allocation5 + $0x5c8] sm:$0xff]  }
  0x9d   :  { %3218 = vmatpush3.bf16.msra.mxu0 %v3550_v14  ;;  %v3598_v14 = vld [vmem:[#allocation5 + $0x508] sm:$0xff]  }
  0x9e   :  { %3240 = vmatpush3.bf16.msra.mxu1 %v3551_v15  ;;  %3219 = vmatprep.subr.bf16.mxu0 %v3552_v16  ;;  %v3599_v15 = vld [vmem:[#allocation5 + $0x588] sm:$0xff]   ;;  %v3600_v16 = vld [vmem:[#allocation5 + $0x550] sm:$0xff]  }
  0x9f   :  { %3241 = vmatprep.subr.bf16.mxu1 %v3553_v17  ;;  %v3601_v17 = vld [vmem:[#allocation5 + $0x5d0] sm:$0xff]  }
  0xa1   :  { %3220 = vmatpush3.bf16.msra.mxu0 %v3554_v18  ;;  %v3602_v18 = vld [vmem:[#allocation5 + $0x510] sm:$0xff]  }
  0xa2   :  { %3242 = vmatpush3.bf16.msra.mxu1 %v3555_v19  ;;  %3221 = vmatprep.subr.bf16.mxu0 %v3556_v20  ;;  %v3603_v19 = vld [vmem:[#allocation5 + $0x590] sm:$0xff]   ;;  %v3604_v20 = vld [vmem:[#allocation5 + $0x558] sm:$0xff]  }
  0xa3   :  { %3243 = vmatprep.subr.bf16.mxu1 %v3557_v21  ;;  %v3605_v21 = vld [vmem:[#allocation5 + $0x5d8] sm:$0xff]  }
  0xa5   :  { %3222 = vmatpush3.bf16.msra.mxu0 %v3558_v22  ;;  %v3606_v22 = vld [vmem:[#allocation5 + $0x518] sm:$0xff]  }
  0xa6   :  { %3244 = vmatpush3.bf16.msra.mxu1 %v3559_v23  ;;  %3251 = vmatprep.subr.bf16.mxu0 %v3560_v32  ;;  %v3607_v23 = vld [vmem:[#allocation5 + $0x598] sm:$0xff]   ;;  %v3616_v32 = vld [vmem:[#allocation5 + $0x570] sm:$0xff]  }
  0xa7   :  { %3273 = vmatprep.subr.bf16.mxu1 %v3561_v33  ;;  %v3617_v33 = vld [vmem:[#allocation5 + $0x5f0] sm:$0xff]  }
  0xa8   :  { %2434 = vmatmul.mubr.bf16.vlgmr.msra.gmra.mrb[12].mxu0 %v86_v29  ;;  %v3613_v29 = vld [vmem:[#allocation5 + $0x5e8] sm:$0xff]  }
  0xa9   :  { %2474 = vmatmul.mubr.bf16.vlgmr.msra.gmra.mrb[12].mxu1 %v88_v31  ;;  %3252 = vmatpush3.bf16.msra.mxu0 %v3562_v34  ;;  %v3615_v31 = vld [vmem:[#allocation5 + $0x5a8] sm:$0xff]   ;;  %v3618_v34 = vld [vmem:[#allocation5 + $0x530] sm:$0xff]  }
  0xaa   :  { %3274 = vmatpush3.bf16.msra.mxu1 %v3563_v35  ;;  %3253 = vmatprep.subr.bf16.mxu0 %v3564_v36  ;;  %v3619_v35 = vld [vmem:[#allocation5 + $0x5b0] sm:$0xff]   ;;  %v3620_v36 = vld [vmem:[#allocation5 + $0x578] sm:$0xff]  }
  0xab   :  { %3275 = vmatprep.subr.bf16.mxu1 %v3565_v37  ;;  %2513 = vmatprep.mubr.bf16.mxu0 %v91_v2  ;;  %v3621_v37 = vld [vmem:[#allocation5 + $0x5f8] sm:$0xff]   ;;  %v3642_v2 = vld [vmem:[#allocation5 + $0x620] sm:$0xff]  }
  0xac   :  { %2553 = vmatprep.mubr.bf16.mxu1 %v93_v3  ;;  %v3643_v3 = vld [vmem:[#allocation5 + $0x6a0] sm:$0xff]  }
  0xad   :  { %3254 = vmatpush3.bf16.msra.mxu0 %v3566_v38  ;;  %v3622_v38 = vld [vmem:[#allocation5 + $0x538] sm:$0xff]  }
  0xae   :  { %3276 = vmatpush3.bf16.msra.mxu1 %v3567_v39  ;;  %3255 = vmatprep.subr.bf16.mxu0 %v3568_v40  ;;  %v3623_v39 = vld [vmem:[#allocation5 + $0x5b8] sm:$0xff]   ;;  %v63_v40 = vld [vmem:[#allocation2 + $0xa8] sm:$0xff] }
  0xaf   :  { %3277 = vmatprep.subr.bf16.mxu1 %v3569_v41  ;;  %v95_v41 = vpack.c.bf16 %v63_v40, %v63_v40 }
  0xb1   :  { %3256 = vmatpush3.bf16.msra.mxu0 %v3570_v42  ;;  %v65_v42 = vld [vmem:[#allocation2 + $0xb8] sm:$0xff] }
  0xb2   :  { %3278 = vmatpush3.bf16.msra.mxu1 %v3571_v43  ;;  %3257 = vmatprep.subr.bf16.mxu0 %v3572_v44  ;;  %v62_v43 = vld [vmem:[#allocation2 + $0xa0] sm:$0xff]  ;;  %v64_v44 = vld [vmem:[#allocation2 + $0xb0] sm:$0xff] }
  0xb3   :  { %3279 = vmatprep.subr.bf16.mxu1 %v3573_v45  ;;  %v97_v45 = vpack.c.bf16 %v65_v42, %v65_v42 }
  0xb5   :  { %3258 = vmatpush3.bf16.msra.mxu0 %v3574_v46  ;;  %v94_v46 = vpack.c.bf16 %v62_v43, %v62_v43  ;;  %v3672_v43 = vld [vmem:[#allocation5 + $0x760] sm:$0xff]  }
  0xb6   :  { %3280 = vmatpush3.bf16.msra.mxu1 %v3575_v47  ;;  %3259 = vmatprep.subr.bf16.mxu0 %v3576_v48  ;;  %v96_v47 = vpack.c.bf16 %v64_v44, %v64_v44  ;;  %v3624_v48 = vld [vmem:[#allocation5 + $0x640] sm:$0xff]  }
  0xb7   :  { %3281 = vmatprep.subr.bf16.mxu1 %v3577_v49  ;;  %v3625_v49 = vld [vmem:[#allocation5 + $0x6c0] sm:$0xff]  }
  0xb9   :  { %3260 = vmatpush3.bf16.msra.mxu0 %v3578_v50  ;;  %v3626_v50 = vld [vmem:[#allocation5 + $0x600] sm:$0xff]  }
  0xba   :  { %3282 = vmatpush3.bf16.msra.mxu1 %v3579_v51  ;;  %3261 = vmatprep.subr.bf16.mxu0 %v3580_v52  ;;  %v3627_v51 = vld [vmem:[#allocation5 + $0x680] sm:$0xff]   ;;  %v3628_v52 = vld [vmem:[#allocation5 + $0x648] sm:$0xff]  }
  0xbb   :  { %3283 = vmatprep.subr.bf16.mxu1 %v3581_v53  ;;  %v3629_v53 = vld [vmem:[#allocation5 + $0x6c8] sm:$0xff]  }
  0xbd   :  { %3262 = vmatpush3.bf16.msra.mxu0 %v3582_v54  ;;  %v3630_v54 = vld [vmem:[#allocation5 + $0x608] sm:$0xff]  }
  0xbe   :  { %3284 = vmatpush3.bf16.msra.mxu1 %v3583_v55  ;;  %3263 = vmatprep.subr.bf16.mxu0 %v3584_v56  ;;  %v3631_v55 = vld [vmem:[#allocation5 + $0x688] sm:$0xff]   ;;  %v3632_v56 = vld [vmem:[#allocation5 + $0x650] sm:$0xff]  }
  0xbf   :  { %3285 = vmatprep.subr.bf16.mxu1 %v3585_v57  ;;  %v3633_v57 = vld [vmem:[#allocation5 + $0x6d0] sm:$0xff]  }
  0xc1   :  { %3264 = vmatpush3.bf16.msra.mxu0 %v3586_v58  ;;  %v3634_v58 = vld [vmem:[#allocation5 + $0x610] sm:$0xff]  }
  0xc2   :  { %3286 = vmatpush3.bf16.msra.mxu1 %v3587_v59  ;;  %3265 = vmatprep.subr.bf16.mxu0 %v3588_v60  ;;  %v3635_v59 = vld [vmem:[#allocation5 + $0x690] sm:$0xff]   ;;  %v3636_v60 = vld [vmem:[#allocation5 + $0x658] sm:$0xff]  }
  0xc3   :  { %3287 = vmatprep.subr.bf16.mxu1 %v3589_v61  ;;  %v3637_v61 = vld [vmem:[#allocation5 + $0x6d8] sm:$0xff]  }
  0xc5   :  { %3266 = vmatpush3.bf16.msra.mxu0 %v3590_v62  ;;  %v3638_v62 = vld [vmem:[#allocation5 + $0x618] sm:$0xff]  }
  0xc6   :  { %3288 = vmatpush3.bf16.msra.mxu1 %v3591_v63  ;;  %3295 = vmatprep.subr.bf16.mxu0 %v3592_v8  ;;  %v3639_v63 = vld [vmem:[#allocation5 + $0x698] sm:$0xff]   ;;  %v3648_v8 = vld [vmem:[#allocation5 + $0x670] sm:$0xff]  }
  0xc7   :  { %3317 = vmatprep.subr.bf16.mxu1 %v3593_v9  ;;  %v3649_v9 = vld [vmem:[#allocation5 + $0x6f0] sm:$0xff]  }
  0xc8   :  { %2514 = vmatmul.mubr.bf16.vlgmr.msra.gmra.mrb[16].mxu0 %v90_v6  ;;  %v3646_v6 = vld [vmem:[#allocation5 + $0x628] sm:$0xff]  }
  0xc9   :  { %2554 = vmatmul.mubr.bf16.vlgmr.msra.gmra.mrb[16].mxu1 %v92_v7  ;;  %3296 = vmatpush3.bf16.msra.mxu0 %v3594_v10  ;;  %v3647_v7 = vld [vmem:[#allocation5 + $0x6a8] sm:$0xff]   ;;  %v3650_v10 = vld [vmem:[#allocation5 + $0x630] sm:$0xff]  }
  0xca   :  { %3318 = vmatpush3.bf16.msra.mxu1 %v3595_v11  ;;  %3297 = vmatprep.subr.bf16.mxu0 %v3596_v12  ;;  %v3651_v11 = vld [vmem:[#allocation5 + $0x6b0] sm:$0xff]   ;;  %v3652_v12 = vld [vmem:[#allocation5 + $0x678] sm:$0xff]  }
  0xcb   :  { %3319 = vmatprep.subr.bf16.mxu1 %v3597_v13  ;;  %2593 = vmatprep.mubr.bf16.mxu0 %v95_v41  ;;  %v3653_v13 = vld [vmem:[#allocation5 + $0x6f8] sm:$0xff]  }
  0xcc   :  { %2633 = vmatprep.mubr.bf16.mxu1 %v97_v45  ;;  %v3671_v41 = vld [vmem:[#allocation5 + $0x798] sm:$0xff]  }
  0xcd   :  { %3298 = vmatpush3.bf16.msra.mxu0 %v3598_v14  ;;  %v3654_v14 = vld [vmem:[#allocation5 + $0x638] sm:$0xff]  }
  0xce   :  { %3320 = vmatpush3.bf16.msra.mxu1 %v3599_v15  ;;  %3299 = vmatprep.subr.bf16.mxu0 %v3600_v16  ;;  %v3655_v15 = vld [vmem:[#allocation5 + $0x6b8] sm:$0xff]   ;;  %v67_v16 = vld [vmem:[#allocation2 + $0xc8] sm:$0xff] }
  0xcf   :  { %3321 = vmatprep.subr.bf16.mxu1 %v3601_v17  ;;  %v69_v17 = vld [vmem:[#allocation2 + $0xd8] sm:$0xff] }
  0xd1   :  { %3300 = vmatpush3.bf16.msra.mxu0 %v3602_v18  ;;  %v66_v18 = vld [vmem:[#allocation2 + $0xc0] sm:$0xff] }
  0xd2   :  { %3322 = vmatpush3.bf16.msra.mxu1 %v3603_v19  ;;  %3301 = vmatprep.subr.bf16.mxu0 %v3604_v20  ;;  %v99_v19 = vpack.c.bf16 %v67_v16, %v67_v16  ;;  %v101_v20 = vpack.c.bf16 %v69_v17, %v69_v17 }
  0xd3   :  { %3323 = vmatprep.subr.bf16.mxu1 %v3605_v21  ;;  %v98_v21 = vpack.c.bf16 %v66_v18, %v66_v18 }
  0xd5   :  { %3302 = vmatpush3.bf16.msra.mxu0 %v3606_v22  ;;  %v68_v22 = vld [vmem:[#allocation2 + $0xd0] sm:$0xff] }
  0xd6   :  { %3324 = vmatpush3.bf16.msra.mxu1 %v3607_v23  ;;  %3303 = vmatprep.subr.bf16.mxu0 %v3608_v24  ;;  %v100_v23 = vpack.c.bf16 %v68_v22, %v68_v22  ;;  %v3656_v24 = vld [vmem:[#allocation5 + $0x740] sm:$0xff]  }
  0xd7   :  { %3325 = vmatprep.subr.bf16.mxu1 %v3609_v25  ;;  %v3657_v25 = vld [vmem:[#allocation5 + $0x7c0] sm:$0xff]  }
  0xd9   :  { %3304 = vmatpush3.bf16.msra.mxu0 %v3610_v26  ;;  %v3658_v26 = vld [vmem:[#allocation5 + $0x700] sm:$0xff]  }
  0xda   :  { %3326 = vmatpush3.bf16.msra.mxu1 %v3611_v27  ;;  %3305 = vmatprep.subr.bf16.mxu0 %v3612_v28  ;;  %v3659_v27 = vld [vmem:[#allocation5 + $0x780] sm:$0xff]   ;;  %v3660_v28 = vld [vmem:[#allocation5 + $0x748] sm:$0xff]  }
  0xdb   :  { %3327 = vmatprep.subr.bf16.mxu1 %v3613_v29  ;;  %v3661_v29 = vld [vmem:[#allocation5 + $0x7c8] sm:$0xff]  }
  0xdd   :  { %3306 = vmatpush3.bf16.msra.mxu0 %v3614_v30  ;;  %v3662_v30 = vld [vmem:[#allocation5 + $0x708] sm:$0xff]  }
  0xde   :  { %3328 = vmatpush3.bf16.msra.mxu1 %v3615_v31  ;;  %3307 = vmatprep.subr.bf16.mxu0 %v3616_v32  ;;  %v3663_v31 = vld [vmem:[#allocation5 + $0x788] sm:$0xff]   ;;  %v3664_v32 = vld [vmem:[#allocation5 + $0x750] sm:$0xff]  }
  0xdf   :  { %3329 = vmatprep.subr.bf16.mxu1 %v3617_v33  ;;  %v3665_v33 = vld [vmem:[#allocation5 + $0x7d0] sm:$0xff]  }
  0xe1   :  { %3308 = vmatpush3.bf16.msra.mxu0 %v3618_v34  ;;  %v3666_v34 = vld [vmem:[#allocation5 + $0x710] sm:$0xff]  }
  0xe2   :  { %3330 = vmatpush3.bf16.msra.mxu1 %v3619_v35  ;;  %3309 = vmatprep.subr.bf16.mxu0 %v3620_v36  ;;  %v3667_v35 = vld [vmem:[#allocation5 + $0x790] sm:$0xff]   ;;  %v3668_v36 = vld [vmem:[#allocation5 + $0x758] sm:$0xff]  }
  0xe3   :  { %3331 = vmatprep.subr.bf16.mxu1 %v3621_v37  ;;  %v3669_v37 = vld [vmem:[#allocation5 + $0x7d8] sm:$0xff]  }
  0xe5   :  { %3310 = vmatpush3.bf16.msra.mxu0 %v3622_v38 }
  0xe6   :  { %3332 = vmatpush3.bf16.msra.mxu1 %v3623_v39  ;;  %3339 = vmatprep.subr.bf16.mxu0 %v3624_v48  ;;  %v3670_v39 = vld [vmem:[#allocation5 + $0x718] sm:$0xff]  }
  0xe7   :  { %3361 = vmatprep.subr.bf16.mxu1 %v3625_v49  ;;  %v3674_v49 = vld [vmem:[#allocation5 + $0x720] sm:$0xff]  }
  0xe8   :  { %2594 = vmatmul.mubr.bf16.vlgmr.msra.gmra.mrb[20].mxu0 %v94_v46  ;;  %v3673_v46 = vld [vmem:[#allocation5 + $0x7e0] sm:$0xff]  }
  0xe9   :  { %2634 = vmatmul.mubr.bf16.vlgmr.msra.gmra.mrb[20].mxu1 %v96_v47  ;;  %3340 = vmatpush3.bf16.msra.mxu0 %v3626_v50 }
  0xea   :  { %3362 = vmatpush3.bf16.msra.mxu1 %v3627_v51  ;;  %3341 = vmatprep.subr.bf16.mxu0 %v3628_v52  ;;  %v3675_v51 = vld [vmem:[#allocation5 + $0x7a0] sm:$0xff]  }
  0xeb   :  { %3363 = vmatprep.subr.bf16.mxu1 %v3629_v53  ;;  %2673 = vmatprep.mubr.bf16.mxu0 %v99_v19  ;;  %v2818_v52 = vld [vmem:[%s3833_s2] ss:$0 sm:$0xff]  ;;  %s3764_s2 = smov [#allocation7]  }
  0xec   :  { %2713 = vmatprep.mubr.bf16.mxu1 %v101_v20  ;;  %s2808_s11 = sshll.u32 %s3764_s2, 4  ;;  %s2809_s11 = int_to_ptr.vmem [resolvable:$true] %s2808_s11 }
  0xed   :  { %3342 = vmatpush3.bf16.msra.mxu0 %v3630_v54  ;;  %s3732_s12 = scalar_lea.vmem %s2809_s11, 128  ;;  %p3737_p3 = scmp.lt.s32.totalorder %s2809_s11, %s2809_s11 }
  0xee   :  { %3364 = vmatpush3.bf16.msra.mxu1 %v3631_v55  ;;  %3343 = vmatprep.subr.bf16.mxu0 %v3632_v56  ;;  %v3676_v55 = vld [vmem:[#allocation5 + $0x768] sm:$0xff]   ;;  %p3733_p2 = scmp.ne.s32.totalorder %s2809_s11, %s3732_s12  ;;  %p3738_p4 = scmp.lt.s32.totalorder %s3732_s12, %s3732_s12 }
  0xef   :  { %3365 = vmatprep.subr.bf16.mxu1 %v3633_v57  ;;  %v3677_v57 = vld [vmem:[#allocation5 + $0x7e8] sm:$0xff]  }
  0xf0   :  { %p3739_p5 = por %p3738_p4, %p3737_p3 }
  0xf1   :  { %3344 = vmatpush3.bf16.msra.mxu0 %v3634_v58 }
  0xf2   :  { %3366 = vmatpush3.bf16.msra.mxu1 %v3635_v59  ;;  %3345 = vmatprep.subr.bf16.mxu0 %v3636_v60  ;;  %v3678_v59 = vld [vmem:[#allocation5 + $0x728] sm:$0xff]   ;;  %p3740_p6 = pnand %p3739_p5, %p3733_p2 }
  0xf3   :  { %3367 = vmatprep.subr.bf16.mxu1 %v3637_v61  ;;  %v3679_v60 = vld [vmem:[#allocation5 + $0x7a8] sm:$0xff]   ;;  %v3680_v61 = vld [vmem:[#allocation5 + $0x770] sm:$0xff]  }
  0xf5   :  { %3346 = vmatpush3.bf16.msra.mxu0 %v3638_v62  ;;  %v3681_v62 = vld [vmem:[#allocation5 + $0x7f0] sm:$0xff]  }
  0xf6   :  { %3368 = vmatpush3.bf16.msra.mxu1 %v3639_v63  ;;  %3347 = vmatprep.subr.bf16.mxu0 %v3640_v0  ;;  %v3682_v63 = vld [vmem:[#allocation5 + $0x730] sm:$0xff]  }
  0xf7   :  { %3369 = vmatprep.subr.bf16.mxu1 %v3641_v1  ;;  %v3683_v0 = vld [vmem:[#allocation5 + $0x7b0] sm:$0xff]   ;;  %v3684_v1 = vld [vmem:[#allocation5 + $0x778] sm:$0xff]  }
  0xf9   :  { %3348 = vmatpush3.bf16.msra.mxu0 %v3642_v2  ;;  %v3685_v2 = vld [vmem:[#allocation5 + $0x7f8] sm:$0xff]  }
  0xfa   :  { %3370 = vmatpush3.bf16.msra.mxu1 %v3643_v3  ;;  %3349 = vmatprep.subr.bf16.mxu0 %v3644_v4  ;;  %v3686_v3 = vld [vmem:[#allocation5 + $0x738] sm:$0xff]  }
  0xfb   :  { %3371 = vmatprep.subr.bf16.mxu1 %v3645_v5  ;;  %v3687_v4 = vld [vmem:[#allocation5 + $0x7b8] sm:$0xff]   ;;  %v71_v5 = vld [vmem:[#allocation2 + $0xe8] sm:$0xff] }
  0xfd   :  { %3350 = vmatpush3.bf16.msra.mxu0 %v3646_v6  ;;  %v103_v6 = vpack.c.bf16 %v71_v5, %v71_v5 }
  0xfe   :  { %3372 = vmatpush3.bf16.msra.mxu1 %v3647_v7  ;;  %3351 = vmatprep.subr.bf16.mxu0 %v3648_v8  ;;  %v73_v7 = vld [vmem:[#allocation2 + $0xf8] sm:$0xff]  ;;  %v70_v8 = vld [vmem:[#allocation2 + $0xe0] sm:$0xff] }
  0xff   :  { %3373 = vmatprep.subr.bf16.mxu1 %v3649_v9  ;;  %v72_v9 = vld [vmem:[#allocation2 + $0xf0] sm:$0xff] }
 0x101   :  { %3352 = vmatpush3.bf16.msra.mxu0 %v3650_v10  ;;  %v105_v10 = vpack.c.bf16 %v73_v7, %v73_v7 }
 0x102   :  { %3374 = vmatpush3.bf16.msra.mxu1 %v3651_v11  ;;  %3353 = vmatprep.subr.bf16.mxu0 %v3652_v12  ;;  %v102_v11 = vpack.c.bf16 %v70_v8, %v70_v8  ;;  %v104_v12 = vpack.c.bf16 %v72_v9, %v72_v9 }
 0x103   :  { %3375 = vmatprep.subr.bf16.mxu1 %v3653_v13 }
 0x105   :  { %3354 = vmatpush3.bf16.msra.mxu0 %v3654_v14 }
 0x106   :  { %3376 = vmatpush3.bf16.msra.mxu1 %v3655_v15  ;;  %3383 = vmatprep.subr.bf16.mxu0 %v3656_v24 }
 0x107   :  { %3405 = vmatprep.subr.bf16.mxu1 %v3657_v25 }
 0x108   :  { %2674 = vmatmul.mubr.bf16.vlgmr.msra.gmra.mrb[24].mxu0 %v98_v21 }
 0x109   :  { %2714 = vmatmul.mubr.bf16.vlgmr.msra.gmra.mrb[24].mxu1 %v100_v23  ;;  %3384 = vmatpush3.bf16.msra.mxu0 %v3658_v26 }
 0x10a   :  { %3406 = vmatpush3.bf16.msra.mxu1 %v3659_v27  ;;  %3385 = vmatprep.subr.bf16.mxu0 %v3660_v28 }
 0x10b   :  { %3407 = vmatprep.subr.bf16.mxu1 %v3661_v29  ;;  %2753 = vmatprep.mubr.bf16.mxu0 %v103_v6 }
 0x10c   :  { %2793 = vmatprep.mubr.bf16.mxu1 %v105_v10 }
 0x10d   :  { %3386 = vmatpush3.bf16.msra.mxu0 %v3662_v30 }
 0x10e   :  { %3408 = vmatpush3.bf16.msra.mxu1 %v3663_v31  ;;  %3387 = vmatprep.subr.bf16.mxu0 %v3664_v32 }
 0x10f   :  { %3409 = vmatprep.subr.bf16.mxu1 %v3665_v33 }
 0x111   :  { %3388 = vmatpush3.bf16.msra.mxu0 %v3666_v34 }
 0x112   :  { %3410 = vmatpush3.bf16.msra.mxu1 %v3667_v35  ;;  %3389 = vmatprep.subr.bf16.mxu0 %v3668_v36 }
 0x113   :  { %3411 = vmatprep.subr.bf16.mxu1 %v3669_v37 }
 0x115   :  { %3390 = vmatpush3.bf16.msra.mxu0 %v3670_v39 }
 0x116   :  { %3412 = vmatpush3.bf16.msra.mxu1 %v3671_v41  ;;  %3391 = vmatprep.subr.bf16.mxu0 %v3672_v43 }
 0x117   :  { %3413 = vmatprep.subr.bf16.mxu1 %v3673_v46 }
 0x119   :  { %3392 = vmatpush3.bf16.msra.mxu0 %v3674_v49 }
 0x11a   :  { %3414 = vmatpush3.bf16.msra.mxu1 %v3675_v51  ;;  %3393 = vmatprep.subr.bf16.mxu0 %v3676_v55 }
 0x11b   :  { %v3091_v38 = vpop.f32.mrb[0].mxu0  ;;  %3415 = vmatprep.subr.bf16.mxu1 %v3677_v57 }
 0x11c   :  { %v3113_v40 = vpop.f32.mrb[0].mxu1  ;;  %v3092_v42 = vpop.f32.mrb[1].mxu0 }
 0x11d   :  { %v3093_v44 = vadd.f32 %v3092_v42, %v3091_v38  ;;  %v3114_v45 = vpop.f32.mrb[1].mxu1  ;;  %v3094_v48 = vpop.f32.mrb[2].mxu0  ;;  %3394 = vmatpush3.bf16.msra.mxu0 %v3678_v59 }
 0x11e   :  { %v3115_v47 = vadd.f32 %v3114_v45, %v3113_v40  ;;  %v3116_v50 = vpop.f32.mrb[2].mxu1  ;;  %v3095_v53 = vpop.f32.mrb[3].mxu0  ;;  %3416 = vmatpush3.bf16.msra.mxu1 %v3679_v60  ;;  %3395 = vmatprep.subr.bf16.mxu0 %v3680_v61 }
 0x11f   :  { %v2196_v54 = vadd.f32 %v3093_v44, %v2818_v52  ;;  %v3117_v56 = vpop.f32.mrb[3].mxu1  ;;  %3417 = vmatprep.subr.bf16.mxu1 %v3681_v62 }
 0x121   :  { %v2236_v58 = vadd.f32 %v3115_v47, %v2196_v54  ;;  %3396 = vmatpush3.bf16.msra.mxu0 %v3682_v63 }
 0x122   :  { %3418 = vmatpush3.bf16.msra.mxu1 %v3683_v0  ;;  %3397 = vmatprep.subr.bf16.mxu0 %v3684_v1 }
 0x123   :  { %3419 = vmatprep.subr.bf16.mxu1 %v3685_v2 }
 0x125   :  { %3398 = vmatpush3.bf16.msra.mxu0 %v3686_v3 }
 0x126   :  { %3420 = vmatpush3.bf16.msra.mxu1 %v3687_v4 }
 0x128   :  { %2754 = vmatmul.mubr.bf16.vlgmr.msra.gmra.mrb[28].mxu0 %v102_v11 }
 0x129   :  { %2794 = vmatmul.mubr.bf16.vlgmr.msra.gmra.mrb[28].mxu1 %v104_v12 }
 0x13b   :  { %v3135_v13 = vpop.f32.mrb[4].mxu0 }
 0x13c   :  { %v3157_v14 = vpop.f32.mrb[4].mxu1  ;;  %v3136_v15 = vpop.f32.mrb[5].mxu0 }
 0x13d   :  { %v3137_v16 = vadd.f32 %v3136_v15, %v3135_v13  ;;  %v3158_v17 = vpop.f32.mrb[5].mxu1  ;;  %v3138_v18 = vpop.f32.mrb[6].mxu0 }
 0x13e   :  { %v3159_v19 = vadd.f32 %v3158_v17, %v3157_v14  ;;  %v3160_v20 = vpop.f32.mrb[6].mxu1  ;;  %v3139_v21 = vpop.f32.mrb[7].mxu0 }
 0x13f   :  { %v2276_v22 = vadd.f32 %v3137_v16, %v2236_v58  ;;  %v3161_v23 = vpop.f32.mrb[7].mxu1 }
 0x141   :  { %v2316_v24 = vadd.f32 %v3159_v19, %v2276_v22 }
 0x15b   :  { %v3179_v25 = vpop.f32.mrb[8].mxu0 }
 0x15c   :  { %v3201_v26 = vpop.f32.mrb[8].mxu1  ;;  %v3180_v27 = vpop.f32.mrb[9].mxu0 }
 0x15d   :  { %v3181_v28 = vadd.f32 %v3180_v27, %v3179_v25  ;;  %v3202_v29 = vpop.f32.mrb[9].mxu1  ;;  %v3182_v30 = vpop.f32.mrb[10].mxu0 }
 0x15e   :  { %v3203_v31 = vadd.f32 %v3202_v29, %v3201_v26  ;;  %v3204_v32 = vpop.f32.mrb[10].mxu1  ;;  %v3183_v33 = vpop.f32.mrb[11].mxu0 }
 0x15f   :  { %v2356_v34 = vadd.f32 %v3181_v28, %v2316_v24  ;;  %v3205_v35 = vpop.f32.mrb[11].mxu1 }
 0x161   :  { %v2396_v36 = vadd.f32 %v3203_v31, %v2356_v34 }
 0x17b   :  { %v3223_v37 = vpop.f32.mrb[12].mxu0 }
 0x17c   :  { %v3245_v38 = vpop.f32.mrb[12].mxu1  ;;  %v3224_v39 = vpop.f32.mrb[13].mxu0 }
 0x17d   :  { %v3246_v40 = vpop.f32.mrb[13].mxu1  ;;  %v3225_v41 = vadd.f32 %v3224_v39, %v3223_v37  ;;  %v3226_v43 = vpop.f32.mrb[14].mxu0 }
 0x17e   :  { %v3247_v42 = vadd.f32 %v3246_v40, %v3245_v38  ;;  %v3248_v44 = vpop.f32.mrb[14].mxu1  ;;  %v3227_v45 = vpop.f32.mrb[15].mxu0 }
 0x17f   :  { %v3249_v46 = vpop.f32.mrb[15].mxu1  ;;  %v2436_v47 = vadd.f32 %v3225_v41, %v2396_v36 }
 0x181   :  { %v2476_v48 = vadd.f32 %v3247_v42, %v2436_v47 }
 0x19b   :  { %v3267_v49 = vpop.f32.mrb[16].mxu0 }
 0x19c   :  { %v3289_v50 = vpop.f32.mrb[16].mxu1  ;;  %v3268_v51 = vpop.f32.mrb[17].mxu0 }
 0x19d   :  { %v3269_v52 = vadd.f32 %v3268_v51, %v3267_v49  ;;  %v3290_v53 = vpop.f32.mrb[17].mxu1  ;;  %v3270_v54 = vpop.f32.mrb[18].mxu0 }
 0x19e   :  { %v3291_v55 = vadd.f32 %v3290_v53, %v3289_v50  ;;  %v3292_v56 = vpop.f32.mrb[18].mxu1  ;;  %v3271_v57 = vpop.f32.mrb[19].mxu0 }
 0x19f   :  { %v2516_v58 = vadd.f32 %v3269_v52, %v2476_v48  ;;  %v3293_v59 = vpop.f32.mrb[19].mxu1 }
 0x1a1   :  { %v2556_v60 = vadd.f32 %v3291_v55, %v2516_v58 }
 0x1bb   :  { %v3311_v61 = vpop.f32.mrb[20].mxu0 }
 0x1bc   :  { %v3333_v62 = vpop.f32.mrb[20].mxu1  ;;  %v3312_v63 = vpop.f32.mrb[21].mxu0 }
 0x1bd   :  { %v3313_v0 = vadd.f32 %v3312_v63, %v3311_v61  ;;  %v3334_v1 = vpop.f32.mrb[21].mxu1  ;;  %v3314_v2 = vpop.f32.mrb[22].mxu0 }
 0x1be   :  { %v3335_v3 = vadd.f32 %v3334_v1, %v3333_v62  ;;  %v3336_v4 = vpop.f32.mrb[22].mxu1  ;;  %v3315_v5 = vpop.f32.mrb[23].mxu0 }
 0x1bf   :  { %v2596_v6 = vadd.f32 %v3313_v0, %v2556_v60  ;;  %v3337_v7 = vpop.f32.mrb[23].mxu1 }
 0x1c1   :  { %v2636_v8 = vadd.f32 %v3335_v3, %v2596_v6 }
 0x1db   :  { %v3355_v9 = vpop.f32.mrb[24].mxu0 }
 0x1dc   :  { %v3377_v10 = vpop.f32.mrb[24].mxu1  ;;  %v3356_v11 = vpop.f32.mrb[25].mxu0 }
 0x1dd   :  { %v3378_v12 = vpop.f32.mrb[25].mxu1  ;;  %v3357_v13 = vadd.f32 %v3356_v11, %v3355_v9  ;;  %v3358_v15 = vpop.f32.mrb[26].mxu0 }
 0x1de   :  { %v3379_v14 = vadd.f32 %v3378_v12, %v3377_v10  ;;  %v3380_v16 = vpop.f32.mrb[26].mxu1  ;;  %v3359_v17 = vpop.f32.mrb[27].mxu0 }
 0x1df   :  { %v3381_v18 = vpop.f32.mrb[27].mxu1  ;;  %v2676_v19 = vadd.f32 %v3357_v13, %v2636_v8 }
 0x1e1   :  { %v2716_v20 = vadd.f32 %v3379_v14, %v2676_v19 }
 0x1fb   :  { %v3399_v21 = vpop.f32.mrb[28].mxu0 }
 0x1fc   :  { %v3421_v22 = vpop.f32.mrb[28].mxu1  ;;  %v3400_v23 = vpop.f32.mrb[29].mxu0 }
 0x1fd   :  { %v3401_v24 = vadd.f32 %v3400_v23, %v3399_v21  ;;  %v3422_v25 = vpop.f32.mrb[29].mxu1  ;;  %v3402_v26 = vpop.f32.mrb[30].mxu0 }
 0x1fe   :  { %v3423_v27 = vadd.f32 %v3422_v25, %v3421_v22  ;;  %v3424_v28 = vpop.f32.mrb[30].mxu1  ;;  %v3403_v29 = vpop.f32.mrb[31].mxu0 }
 0x1ff   :  { %v2756_v30 = vadd.f32 %v3401_v24, %v2716_v20  ;;  %v3425_v31 = vpop.f32.mrb[31].mxu1 }
 0x201   :  { %v2796_v32 = vadd.f32 %v3423_v27, %v2756_v30 }
 0x203   :  { %2801 = vst [vmem:[#allocation7] sm:$0xff] %v2796_v32 }
 0x204   :  { %3743 = shalt.err (!%p3740_p6)
}
 0x205   :  { %s3744_s15 = scalar_lea.hbm %s3834_s3, 128 }
 0x206   :  { %p3745_p7 = scmp.ne.s32.totalorder %s3834_s3, %s3744_s15  ;;  %p3748_p8 = scmp.lt.u32.totalorder %s3744_s15, %s3834_s3 }
 0x208   :  { %p3750_p9 = pnand %p3748_p8, %p3745_p7 }
 0x20a   :  { %3753 = shalt.err (!%p3750_p9)
}
 0x20b   :  { %2811 = dma.vmem_to_hbm [thread:$0]  %s2809_s11, 128, %s3834_s3, [#allocation4]  }
 0x20c   :  { %3758 = dma.done.wait [#allocation4], 128  }
 0x20d   :  { %3759 = vsyncadd [#allocation4], 4294967168 }
 0x20e   :  { %2815 = vsyncpa [#allocation3], 1 }
 0x20f   :  { %2816 = vsyncpa [#allocation6], 1 }
 0x210   :  { %2817 = vsyncpa [#allocation4], 1 }

</bundles_post_ra>
